<compile_context>
chip_gen: v7x
topology: tpu7x:2x2x1
jax: 0.10.0
libtpu: 0.0.40
codegen_flags: <defaults>
</compile_context>

<pallas_src>
import jax
import jax.numpy as jnp
from jax.experimental import pallas as pl
from jax.experimental.pallas import tpu as pltpu


def _round_up(x, m):
    return -(-x // m) * m


def _pad2d(a, rows, cols):
    r, c = a.shape
    if (r, c) == (rows, cols):
        return a
    return jnp.pad(a, ((0, rows - r), (0, cols - c)))


def word2vec_kernel(x_ref, w1_ref, b1_ref, w2_ref, b2_ref, o_ref, hidden_ref):
    # hidden = x @ W1t + b1 : compute once per M tile (first N step) and keep
    # it resident in VMEM scratch across the N (output-vocab) tiles.
    @pl.when(pl.program_id(1) == 0)
    def _():
        hidden_ref[...] = (
            jnp.dot(x_ref[...], w1_ref[...], preferred_element_type=jnp.float32)
            + b1_ref[...].astype(jnp.float32)
        )

    # output N-tile = hidden @ W2t[:, n-tile] + b2[n-tile]
    out = (
        jnp.dot(hidden_ref[...].astype(w2_ref.dtype), w2_ref[...],
                preferred_element_type=jnp.float32)
        + b2_ref[...].astype(jnp.float32)
    )
    o_ref[...] = out.astype(o_ref.dtype)


def prepare_params(w1, b1, w2, b2):
    """One-time (init-time) conversion from PyTorch layout to kernel layout.

    w1: (E, V), b1: (E,), w2: (V, E), b2: (V,) -- PyTorch nn.Linear layout.
    Returns transposed + zero-padded arrays laid out (in_features, out_features),
    padded so V and E are multiples of 128 (lane-dense tiles, no masked stores).
    """
    E, V = w1.shape
    Vp = _round_up(V, 128)
    Ep = _round_up(E, 128)
    return dict(
        w1_t=_pad2d(w1.T, Vp, Ep),            # (Vp, Ep)
        b1_r=_pad2d(b1.reshape(1, E), 1, Ep),  # (1, Ep)
        w2_t=_pad2d(w2.T, Ep, Vp),            # (Ep, Vp)
        b2_r=_pad2d(b2.reshape(1, V), 1, Vp),  # (1, Vp)
        V=V, E=E,
    )


def word2vec_forward(x, params):
    """x: (B, V) in the original (unpadded) feature layout."""
    w1_t, b1_r = params["w1_t"], params["b1_r"]
    w2_t, b2_r = params["w2_t"], params["b2_r"]
    V = params["V"]
    B = x.shape[0]
    Vp, Ep = w1_t.shape

    # Batch (M) tile: whole padded batch when small, else 128-row tiles.
    if B <= 128:
        Bp = _round_up(B, 8)
        tm = Bp
    else:
        Bp = _round_up(B, 128)
        tm = 128

    # Output-vocab (N) tile: largest lane-dense tile dividing padded V.
    tn = next(t for t in (512, 256, 128) if Vp % t == 0)

    x_p = _pad2d(x, Bp, Vp)
    grid = (Bp // tm, Vp // tn)

    a_bytes = jnp.dtype(x.dtype).itemsize
    w_bytes = jnp.dtype(w1_t.dtype).itemsize

    # Advisory cost for XLA scheduling (padded shapes = actual kernel work).
    flops = 2 * Bp * Vp * Ep + 2 * Bp * Ep * Vp
    bytes_accessed = (x_p.size * a_bytes + w1_t.size * w_bytes
                      + w2_t.size * w_bytes + b1_r.size * w_bytes
                      + b2_r.size * w_bytes + Bp * Vp * a_bytes)

    # Explicit VMEM budget: double-buffered streamed blocks + resident W1/b1
    # + hidden scratch, with headroom.
    streamed = 2 * (tm * Vp * a_bytes + Ep * tn * w_bytes
                    + tn * w_bytes + tm * tn * a_bytes)
    resident = 2 * (Vp * Ep * w_bytes + Ep * w_bytes) + tm * Ep * 4
    vmem_limit = max(int(1.5 * (streamed + resident)) + (2 << 20), 32 << 20)

    out_p = pl.pallas_call(
        word2vec_kernel,
        out_shape=jax.ShapeDtypeStruct((Bp, Vp), x.dtype),
        grid_spec=pltpu.PrefetchScalarGridSpec(
            num_scalar_prefetch=0,
            grid=grid,
            in_specs=[
                pl.BlockSpec((tm, Vp), lambda m, n: (m, 0)),   # x (per M tile)
                pl.BlockSpec((Vp, Ep), lambda m, n: (0, 0)),   # W1t (resident)
                pl.BlockSpec((1, Ep), lambda m, n: (0, 0)),    # b1  (resident)
                pl.BlockSpec((Ep, tn), lambda m, n: (0, n)),   # W2t (streamed N tiles)
                pl.BlockSpec((1, tn), lambda m, n: (0, n)),    # b2  (streamed N tiles)
            ],
            out_specs=pl.BlockSpec((tm, tn), lambda m, n: (m, n)),
            scratch_shapes=[pltpu.VMEM((tm, Ep), jnp.float32)],  # resident hidden
        ),
        compiler_params=pltpu.CompilerParams(
            dimension_semantics=("parallel", "arbitrary"),
            vmem_limit_bytes=vmem_limit,
        ),
        cost_estimate=pl.CostEstimate(
            flops=flops, transcendentals=0, bytes_accessed=bytes_accessed),
    )(x_p, w1_t, b1_r, w2_t, b2_r)

    # Slice padding off.
    return out_p[:B, :V]


if __name__ == "__main__":
    # Small, deterministic synthetic setup. V=384 gives three lane-dense
    # 128-wide N tiles; E=96 exercises the zero-padding path (96 -> 128).
    batch = 8
    input_size = 384      # vocab size (one-hot / bag-of-words input)
    embedding_size = 96

    key = jax.random.PRNGKey(0)
    kx, k1, k2, k3, k4 = jax.random.split(key, 5)

    # Mimic PyTorch nn.Linear init: U(-1/sqrt(fan_in), 1/sqrt(fan_in))
    bound1 = 1.0 / (input_size ** 0.5)
    bound2 = 1.0 / (embedding_size ** 0.5)
    w1 = jax.random.uniform(k1, (embedding_size, input_size),
                            jnp.float32, -bound1, bound1)
    b1 = jax.random.uniform(k2, (embedding_size,), jnp.float32, -bound1, bound1)
    w2 = jax.random.uniform(k3, (input_size, embedding_size),
                            jnp.float32, -bound2, bound2)
    b2 = jax.random.uniform(k4, (input_size,), jnp.float32, -bound2, bound2)

    x = jax.random.uniform(kx, (batch, input_size), jnp.float32)

    # One-time weight prep (out of the per-call hot path), then forward.
    params = prepare_params(w1, b1, w2, b2)
    out = word2vec_forward(x, params)
    jax.block_until_ready(out)

    # Cross-check against plain-JAX reference of the PyTorch forward.
    ref = (x @ w1.T + b1) @ w2.T + b2
    assert out.shape == (batch, input_size)
    assert jnp.allclose(out, ref, atol=1e-3, rtol=1e-3), float(
        jnp.max(jnp.abs(out - ref)))

    print("KERNEL_OK")
</pallas_src>

<mosaic_0001>
module attributes {stable_mosaic.version = 11 : i64} {
  func.func @word2vec_kernel(%arg0: i32, %arg1: i32, %arg2: memref<8x384xf32, #tpu.memory_space<vmem>>, %arg3: memref<384x128xf32, #tpu.memory_space<vmem>>, %arg4: memref<1x128xf32, #tpu.memory_space<vmem>>, %arg5: memref<128x128xf32, #tpu.memory_space<vmem>>, %arg6: memref<1x128xf32, #tpu.memory_space<vmem>>, %arg7: memref<8x128xf32, #tpu.memory_space<vmem>>, %arg8: memref<8x128xf32, #tpu.memory_space<vmem>>) attributes {dimension_semantics = [#tpu.dimension_semantics<parallel>, #tpu.dimension_semantics<arbitrary>], iteration_bounds = array<i64: 1, 3>, scalar_prefetch = 0 : i64, scratch_operands = 1 : i64, tpu.core_type = #tpu.core_type<tc>, window_params = [{transform_indices = @transform_0, window_bounds = array<i64: 8, 384>}, {pipeline_mode = #tpu.pipeline_mode<synchronous>, transform_indices = @transform_1, window_bounds = array<i64: 384, 128>}, {pipeline_mode = #tpu.pipeline_mode<synchronous>, transform_indices = @transform_2, window_bounds = array<i64: 1, 128>}, {transform_indices = @transform_3, window_bounds = array<i64: 128, 128>}, {transform_indices = @transform_4, window_bounds = array<i64: 1, 128>}, {transform_indices = @transform_5, window_bounds = array<i64: 8, 128>}]} {
    %c0_i32 = arith.constant 0 : i32
    %0 = arith.cmpi eq, %arg1, %c0_i32 : i32
    %1 = arith.extui %0 : i1 to i32
    %c0_i32_0 = arith.constant 0 : i32
    %2 = arith.cmpi ne, %1, %c0_i32_0 : i32
    scf.if %2 {
      %c0_8 = arith.constant 0 : index
      %c0_9 = arith.constant 0 : index
      %10 = vector.load %arg2[%c0_8, %c0_9] : memref<8x384xf32, #tpu.memory_space<vmem>>, vector<8x384xf32>
      %c0_10 = arith.constant 0 : index
      %c0_11 = arith.constant 0 : index
      %11 = vector.load %arg3[%c0_10, %c0_11] : memref<384x128xf32, #tpu.memory_space<vmem>>, vector<384x128xf32>
      %cst_12 = arith.constant dense<0.000000e+00> : vector<8x128xf32>
      %12 = tpu.matmul %10, %11, %cst_12 {dimension_numbers = #tpu.dot_dimension_numbers<[1], [0], [0], [1], [0, 0, 1, 1], [], []>} : vector<8x384xf32>, vector<384x128xf32>, vector<8x128xf32> -> vector<8x128xf32>
      %c0_13 = arith.constant 0 : index
      %c0_14 = arith.constant 0 : index
      %13 = vector.load %arg4[%c0_13, %c0_14] : memref<1x128xf32, #tpu.memory_space<vmem>>, vector<1x128xf32>
      %14 = vector.broadcast %13 : vector<1x128xf32> to vector<8x128xf32>
      %15 = arith.addf %12, %14 : vector<8x128xf32>
      %c0_15 = arith.constant 0 : index
      %c0_16 = arith.constant 0 : index
      %16 = vector.load %arg8[%c0_15, %c0_16] : memref<8x128xf32, #tpu.memory_space<vmem>>, vector<8x128xf32>
      tpu.vector_store %arg8[%c0_15, %c0_16], %15 {strides = array<i32>} : memref<8x128xf32, #tpu.memory_space<vmem>>, vector<8x128xf32>,
    } else {
    }
    %c0 = arith.constant 0 : index
    %c0_1 = arith.constant 0 : index
    %3 = vector.load %arg8[%c0, %c0_1] : memref<8x128xf32, #tpu.memory_space<vmem>>, vector<8x128xf32>
    %c0_2 = arith.constant 0 : index
    %c0_3 = arith.constant 0 : index
    %4 = vector.load %arg5[%c0_2, %c0_3] : memref<128x128xf32, #tpu.memory_space<vmem>>, vector<128x128xf32>
    %cst = arith.constant dense<0.000000e+00> : vector<8x128xf32>
    %5 = tpu.matmul %3, %4, %cst {dimension_numbers = #tpu.dot_dimension_numbers<[1], [0], [0], [1], [0, 0, 1, 1], [], []>} : vector<8x128xf32>, vector<128x128xf32>, vector<8x128xf32> -> vector<8x128xf32>
    %c0_4 = arith.constant 0 : index
    %c0_5 = arith.constant 0 : index
    %6 = vector.load %arg6[%c0_4, %c0_5] : memref<1x128xf32, #tpu.memory_space<vmem>>, vector<1x128xf32>
    %7 = vector.broadcast %6 : vector<1x128xf32> to vector<8x128xf32>
    %8 = arith.addf %5, %7 : vector<8x128xf32>
    %c0_6 = arith.constant 0 : index
    %c0_7 = arith.constant 0 : index
    %9 = vector.load %arg7[%c0_6, %c0_7] : memref<8x128xf32, #tpu.memory_space<vmem>>, vector<8x128xf32>
    tpu.vector_store %arg7[%c0_6, %c0_7], %8 {strides = array<i32>} : memref<8x128xf32, #tpu.memory_space<vmem>>, vector<8x128xf32>,
    return
  }
  func.func @transform_0(%arg0: i32, %arg1: i32) -> (i32, i32) {
    %c0_i32 = arith.constant 0 : i32
    %c0_i32_0 = arith.constant 0 : i32
    return %arg0, %c0_i32 : i32, i32
  }
  func.func @transform_1(%arg0: i32, %arg1: i32) -> (i32, i32) {
    %c0_i32 = arith.constant 0 : i32
    %c0_i32_0 = arith.constant 0 : i32
    %c0_i32_1 = arith.constant 0 : i32
    return %c0_i32, %c0_i32_0 : i32, i32
  }
  func.func @transform_2(%arg0: i32, %arg1: i32) -> (i32, i32) {
    %c0_i32 = arith.constant 0 : i32
    %c0_i32_0 = arith.constant 0 : i32
    %c0_i32_1 = arith.constant 0 : i32
    return %c0_i32, %c0_i32_0 : i32, i32
  }
  func.func @transform_3(%arg0: i32, %arg1: i32) -> (i32, i32) {
    %c0_i32 = arith.constant 0 : i32
    %c0_i32_0 = arith.constant 0 : i32
    return %c0_i32, %arg1 : i32, i32
  }
  func.func @transform_4(%arg0: i32, %arg1: i32) -> (i32, i32) {
    %c0_i32 = arith.constant 0 : i32
    %c0_i32_0 = arith.constant 0 : i32
    return %c0_i32, %arg1 : i32, i32
  }
  func.func @transform_5(%arg0: i32, %arg1: i32) -> (i32, i32) {
    %c0_i32 = arith.constant 0 : i32
    return %arg0, %arg1 : i32, i32
  }
}

</mosaic_0001>

<bundles_post_ra>
// kernel: tpu_custom_call.1
= control target key start
LH: loop header
LB: loop body
LE: loop exit
PB: predicated region body
PF: predicated region fallthrough
CT: control target
= control target key end

     0   :  { %10 = vsyncpa [#allocation4], 0  ;;  %s1587_s0 = inlined_call_operand.hbm [shape: f32[8,384], index: 0, kind: input, shape index: {}]   ;;  %s1588_s1 = inlined_call_operand.hbm [shape: f32[384,128], index: 1, kind: input, shape index: {}]   ;;  %s1589_s2 = inlined_call_operand.vmem [shape: f32[1,128], index: 2, kind: input, shape index: {}]   ;;  %s1590_s3 = inlined_call_operand.hbm [shape: f32[128,384], index: 3, kind: input, shape index: {}]   ;;  %s1591_s4 = inlined_call_operand.vmem [shape: f32[1,384], index: 4, kind: input, shape index: {}]   ;;  %s1592_s5 = inlined_call_operand.hbm [shape: f32[8,384], index: 5, kind: output, shape index: {}]  }
   0x1   :  { %11 = vsyncpa [#allocation7], 0 }
   0x2   :  { %12 = vsyncpa [#allocation5], 0 }
   0x3   :  { %14 = vsyncpa [#allocation5 + $0x1], 0  ;;  %s1279_s18 = smov 0   ;;  %s1281_s19 = smov 0  }
   0x4   :  { %s1283_s20 = smov 0   ;;  %s1285_s21 = smov 0  }
   0x5   :  { %s1287_s22 = smov 0   ;;  %s1289_s23 = smov 0  }
   0x6 LB: > { %s1310_s24 = sadd.s32 4294967295, %s1234_s23   ;;  %s728_s25 = sadd.s32 4294967294, %s1234_s23   ;;  %s1234_s23 = sphi %s1289_s23, %s20_s23   ;;  %s1230_s22 = sphi %s1287_s22, %s1624_s22   ;;  %s1226_s21 = sphi %s1285_s21, %s1623_s21   ;;  %s1222_s20 = sphi %s1283_s20, %s1622_s20   ;;  %s1218_s19 = sphi %s1281_s19, %s1621_s19   ;;  %s1214_s18 = sphi %s1279_s18, %s1620_s18  }
   0x7   : > { %p114_p0 = scmp.ne.s32.totalorder %s1222_s20, %s1218_s19  ;;  %p115_p1 = scmp.eq.s32.totalorder %s1234_s23, 0 }
   0x8   : > { %p120_p2 = scmp.ne.s32.totalorder %s1218_s19, %s1214_s18  ;;  %p1593_p3 = scmp.eq.s32.totalorder %s1310_s24, 0 }
   0x9   : > { %p172_p4 = scmp.eq.s32.totalorder %s1310_s24, 2  ;;  %p1321_p5 = por %p115_p1, %p114_p0 }
   0xa   : > { %p178_p6 = scmp.eq.s32.totalorder %s728_s25, 2  ;;  %p1327_p7 = por %p1593_p3, %p120_p2 }
   0xb   : > { %p1331_p8 = por %p172_p4, %p114_p0  ;;  %p729_p10 = scmp.ge.s32.totalorder %s1234_s23, 1 }
   0xc   : > { %s1601_s28 = scalar_select %p1327_p7, 1, 0 }
   0xd   : > { %s1602_s29 = scalar_select %p1331_p8, 1, 0 }
   0xe   : > { %p1335_p9 = por %p178_p6, %p120_p2  ;;  %p185_p11 = scmp.lt.s32.totalorder %s1234_s23, 4 }
   0xf   : > { %s1236_s7 = smov [#allocation3]   ;;  %p995_p13 = scmp.lt.s32.totalorder %s1234_s23, 3 }
  0x10   : > { %s1603_s30 = scalar_select %p1335_p9, 1, 0 }
  0x11   : > { %p1341_p12 = pnand %p729_p10, %p185_p11  ;;  %s201_s8 = sshll.u32 %s1236_s7, 4  ;;  %s202_s8 = int_to_ptr.vmem [resolvable:$true] %s201_s8 }
  0x12   : > { %p1350_p1 = pnand %p995_p13, %p1321_p5  ;;  %s1237_s10 = smov [#allocation6]  }
  0x13   : > { %s1604_s6 = scalar_select %p1341_p12, 1, 0 }
  0x14   : > { %p978_p0 = pneg %p1341_p12  ;;  %s211_s11 = sshll.u32 %s1237_s10, 4  ;;  %s1360_s11 = int_to_ptr.vmem [resolvable:$true] %s211_s11 }
  0x15   : > { %s1605_s9 = scalar_select %p1350_p1, 1, 0 }
  0x16   : > { %p1356_p2 = pnand %p978_p0, %p1593_p3  ;;  %s1058_s15 = scalar_lea.hbm %s1587_s0, 384 }
  0x17   : > { %p1059_p4 = scmp.ne.s32.totalorder %s1587_s0, %s1058_s15  ;;  %p1065_p11 = scmp.lt.u32.totalorder %s1058_s15, %s1587_s0 }
  0x18   : > { %p1060_p5 = pneg %p1356_p2 }
  0x1a   : > { %p1061_p6 = pnand %p1060_p5, %p1059_p4 }
  0x1c   : > { %p1062_p10 = pneg %p1061_p6 }
  0x1e   : > { %p1067_p13 = pnand %p1065_p11, %p1062_p10 }
  0x20   : > { %1070 = shalt.err (!%p1067_p13)
}
  0x21   : > { %s1071_s7 = scalar_lea.vmem %s202_s8, 384  ;;  %p1079_p8 = scmp.lt.s32.totalorder %s202_s8, %s202_s8 }
  0x22   : > { %p1072_p0 = scmp.ne.s32.totalorder %s202_s8, %s1071_s7  ;;  %p1080_p7 = scmp.lt.s32.totalorder %s1071_s7, %s1071_s7 }
  0x24   : > { %p1074_p3 = pnand %p1072_p0, %p1060_p5  ;;  %p1081_p12 = por %p1080_p7, %p1079_p8 }
  0x26   : > { %p1075_p9 = pneg %p1074_p3 }
  0x28   : > { %p1082_p1 = pnand %p1081_p12, %p1075_p9 }
  0x2a   : > { %1085 = shalt.err (!%p1082_p1)
}
  0x2b   : > { %981 = dma.hbm_to_vmem [thread:$0]  (!%p1356_p2), %s1587_s0, 384, %s202_s8, [#allocation4]  }
  0x2c   : > { %s1086_s16 = scalar_lea.hbm %s1588_s1, 6144 }
  0x2d   : > { %p1087_p3 = scmp.ne.s32.totalorder %s1588_s1, %s1086_s16  ;;  %p1093_p9 = scmp.lt.u32.totalorder %s1086_s16, %s1588_s1 }
  0x2f   : > { %p1089_p7 = pnand %p1087_p3, %p1060_p5 }
  0x31   : > { %p1090_p8 = pneg %p1089_p7 }
  0x33   : > { %p1095_p12 = pnand %p1093_p9, %p1090_p8 }
  0x35   : > { %1098 = shalt.err (!%p1095_p12)
}
  0x36   : > { %s1099_s8 = scalar_lea.vmem %s1360_s11, 6144  ;;  %p1107_p10 = scmp.lt.s32.totalorder %s1360_s11, %s1360_s11 }
  0x37   : > { %p1100_p1 = scmp.ne.s32.totalorder %s1360_s11, %s1099_s8  ;;  %p1108_p11 = scmp.lt.s32.totalorder %s1099_s8, %s1099_s8 }
  0x39   : > { %p1102_p4 = pnand %p1100_p1, %p1060_p5  ;;  %p1109_p13 = por %p1108_p11, %p1107_p10 }
  0x3b   : > { %p1103_p6 = pneg %p1102_p4 }
  0x3d   : > { %p1110_p0 = pnand %p1109_p13, %p1103_p6 }
  0x3f   : > { %1113 = shalt.err (!%p1110_p0)
}
  0x40   : > { %s1598_s10 = smov 128   ;;  %s1599_s13 = smov 8  }
  0x41   : > { %984 = dma.hbm_to_vmem [thread:$0]  (!%p1356_p2), %s1588_s1, 6144, %s1360_s11, [#allocation7], %s1598_s10, %s1598_s10, %s1599_s13  }
  0x42   : > { %s228_s16 = sand.u32 1, %s1234_s23   ;;  %s29_s17 = sadd.s32 1, %s1230_s22 }
  0x43   : > { %s230_s25 = sand.u32 1, %s1222_s20   ;;  %p30_p5 = scmp.ge.s32.totalorder %s29_s17, 3 }
  0x44   : > { %s733_s27 = sshll.u32 %s230_s25, 7  ;;  %s734_s7 = sshll.u32 %s1230_s22, 7 }
  0x45   : > { %s1626_s17 = smov (%p30_p5, %s29_s17), 0  ;;  %s1421_s12 = scalar_lea.hbm %s1590_s3, %s734_s7 }
  0x46   : > { %s232_s11 = scalar_lea.vmem [#allocation8], %s733_s27  ;;  %s104_s15 = ssub.s32 %s1230_s22, %s1626_s17 }
  0x47   : > { %s238_s14 = sshll.u32 %s232_s11, 4  ;;  %p1427_p2 = scmp.eq.s32.totalorder %s104_s15, 0  ;;  %s1425_s14 = int_to_ptr.vmem [resolvable:$true] %s238_s14 }
  0x48   : > { %s1431_s10 = scalar_lea.sflag [#allocation4], %s228_s16  ;;  %s1114_s13 = scalar_lea.hbm %s1421_s12, 2048 }
  0x49   : > { %p1115_p3 = scmp.ne.s32.totalorder %s1421_s12, %s1114_s13  ;;  %p1608_p7 = scmp.ne.s32.totalorder %s1605_s9, 0 }
  0x4a   : > { %s1119_s7 = scalar_lea.hbm %s1590_s3, 6144  ;;  %p1120_p1 = scmp.lt.u32.totalorder %s1421_s12, %s1590_s3 }
  0x4b   : > { %p1116_p8 = pneg %p1608_p7  ;;  %p1121_p4 = scmp.lt.u32.totalorder %s1119_s7, %s1114_s13 }
  0x4c   : > { %p1123_p10 = scmp.lt.u32.totalorder %s1114_s13, %s1421_s12 }
  0x4d   : > { %p1117_p9 = pnand %p1116_p8, %p1115_p3  ;;  %p1122_p6 = por %p1121_p4, %p1120_p1 }
  0x4f   : > { %p1118_p12 = pneg %p1117_p9  ;;  %p1124_p11 = por %p1123_p10, %p1122_p6 }
  0x51   : > { %p1125_p13 = pnand %p1124_p11, %p1118_p12 }
  0x53   : > { %1128 = shalt.err (!%p1125_p13)
}
  0x54   : > { %s1129_s16 = scalar_lea.vmem %s1425_s14, 2048  ;;  %s1240_s15 = smov [#allocation8]  }
  0x55   : > { %p1130_p0 = scmp.ne.s32.totalorder %s1425_s14, %s1129_s16  ;;  %s1134_s26 = sshll.u32 %s1240_s15, 4  ;;  %s1135_s26 = int_to_ptr.vmem [resolvable:$false] %s1134_s26 }
  0x56   : > { %s1136_s27 = scalar_lea.vmem %s1135_s26, 4096  ;;  %p1137_p9 = scmp.lt.s32.totalorder %s1425_s14, %s1135_s26 }
  0x57   : > { %p1132_p5 = pnand %p1130_p0, %p1116_p8  ;;  %p1138_p1 = scmp.lt.s32.totalorder %s1136_s27, %s1129_s16 }
  0x59   : > { %p1133_p3 = pneg %p1132_p5  ;;  %p1139_p4 = por %p1138_p1, %p1137_p9 }
  0x5b   : > { %p1140_p6 = pnand %p1139_p4, %p1133_p3 }
  0x5d   : > { %1143 = shalt.err (!%p1140_p6)
}
  0x5e   : > { %s1241_s13 = smov 384   ;;  %s1609_s7 = smov 8  }
  0x5f   : > { %s1610_s8 = smov 128   ;;  %s1611_s11 = sadd.s32 1, %s1222_s20 }
  0x60   : > { %988 = dma.hbm_to_vmem [thread:$0]  (!%p1608_p7), %s1421_s12, 2048, %s1425_s14, %s1431_s10, %s1241_s13, %s1610_s8, %s1609_s7  }
  0x61   : > { %s1466_s15 = scalar_select %p1427_p2, %s1222_s20, %s1611_s11  }
  0x62   : > { %p1612_p8 = scmp.ne.s32.totalorder %s1604_s6, 0 }
  0x63   : > { %p1613_p12 = scmp.eq.s32.totalorder (!%p1612_p8), %s1310_s24, 0 }
  0x64   : > { %256 = sbr.rel (%p1612_p8) target bundleno = 637 (0x27d), region = 40 }
  0x6b   : > { %1197 = dma.done.wait (%p1613_p12), [#allocation4], 384   ;;  %p1614_p10 = pmov %p1613_p12 }
  0x6d   : > { %1199 = vsyncadd (%p1614_p10), [#allocation4], 4294966912  ;;  %p1615_p11 = pmov %p1614_p10 }
  0x6e   : > { %p1616_p13 = pmov %p1614_p10 }
  0x6f   : > { %1201 = dma.done.wait (%p1615_p11), [#allocation7], 6144  }
  0x70   : > { %1203 = vsyncadd (%p1616_p13), [#allocation7], 4294961152  ;;  %s266_s9 = sand.u32 1, %s1310_s24   ;;  %s1480_s10 = sand.u32 1, %s1218_s19  }
  0x71   : > { %s738_s6 = sshll.u32 %s1480_s10, 7  ;;  %s267_s12 = scalar_lea.sflag [#allocation4], %s266_s9 }
  0x72   : > { %s1483_s14 = scalar_lea.vmem [#allocation8], %s738_s6  ;;  %p1617_p2 = scmp.ne.s32.totalorder %s1601_s28, 0 }
  0x74   : > { %1205 = dma.done.wait (%p1617_p2), %s267_s12, 2048  }
  0x75   : > { %1207 = vsyncadd (%p1617_p2), %s267_s12, 4294965248  ;;  %s739_s25 = sshll.u32 %s1480_s10, 3  ;;  %p300_p7 = scmp.lt.s32.totalorder %s1226_s21, 2 }
  0x76   : > { %s1498_s13 = scalar_lea.vmem [#allocation9], %s739_s25  ;;  %p740_p0 = scmp.ne.s32.totalorder %s1226_s21, 0 }
  0x77   : > { %s1492_s16 = scalar_select %p300_p7, %s1226_s21, 2 }
  0x78   : > { %306 = sbr.rel (%p740_p0) target bundleno = 375 (0x177), region = 56  ;;  %v326_v0 = vld [vmem:[#allocation6 + $0x80] sm:$0xff] (!%p740_p0)  ;;  %v327_v1 = vld [vmem:[#allocation6 + $0x88] sm:$0xff] (!%p740_p0)  ;;  %v328_v5 = vld [vmem:[#allocation6 + $0x90] sm:$0xff] (!%p740_p0)  ;;  %v1242_v7 = vmov (!%p740_p0), 0.0|0.0   ;;  %vm1243_vm0 = vmmov (!%p740_p0), 0  }
  0x79   : > { %s302_s27 = scalar_lea.vmem %s1591_s4, %s1492_s16  ;;  %v310_v2 = vld [vmem:[#allocation6] sm:$0xff] (!%p740_p0)  ;;  %v886_v3 = vpack.c.bf16 (!%p740_p0), %v327_v1, %v326_v0  ;;  %v311_v4 = vld [vmem:[#allocation6 + $0x8] sm:$0xff] (!%p740_p0)  ;;  %v329_v6 = vld [vmem:[#allocation6 + $0x98] sm:$0xff] (!%p740_p0)  ;;  %918 = vmatprep.subr.bf16.mxu1 (!%p740_p0), %v1242_v7  ;;  %v1244_v8 = vmov (!%p740_p0), 0.0  }
  0x7a   : > { %848 = vmatprep.mubr.msk.f32.mxu1 (!%p740_p0), %vm1243_vm0, %v1244_v8  ;;  %v888_v9 = vpack.c.bf16 (!%p740_p0), %v311_v4, %v310_v2  ;;  %v890_v10 = vpack.c.bf16 (!%p740_p0), %v329_v6, %v328_v5  ;;  %v312_v11 = vld [vmem:[#allocation6 + $0x10] sm:$0xff] (!%p740_p0)  ;;  %v313_v12 = vld [vmem:[#allocation6 + $0x18] sm:$0xff] (!%p740_p0)  ;;  %v342_v13 = vld [vmem:[#allocation6 + $0x100] sm:$0xff] (!%p740_p0) }
  0x7b   : > { %887 = vmatprep.subr.bf16.mxu0 (!%p740_p0), %v886_v3  ;;  %v343_v14 = vld [vmem:[#allocation6 + $0x108] sm:$0xff] (!%p740_p0)  ;;  %v330_v15 = vld [vmem:[#allocation6 + $0xa0] sm:$0xff] (!%p740_p0)  ;;  %v892_v17 = vpack.c.bf16 (!%p740_p0), %v313_v12, %v312_v11  ;;  %v344_v19 = vld [vmem:[#allocation6 + $0x110] sm:$0xff] (!%p740_p0) }
  0x7c   : > { %v331_v16 = vld [vmem:[#allocation6 + $0xa8] sm:$0xff] (!%p740_p0)  ;;  %889 = vmatpush3.bf16.msra.mxu0 (!%p740_p0), %v888_v9  ;;  %v919_v18 = vpack.c.bf16 (!%p740_p0), %v343_v14, %v342_v13  ;;  %v314_v21 = vld [vmem:[#allocation6 + $0x20] sm:$0xff] (!%p740_p0)  ;;  %v345_v23 = vld [vmem:[#allocation6 + $0x118] sm:$0xff] (!%p740_p0) }
  0x7d   : > { %891 = vmatprep.subr.bf16.mxu0 (!%p740_p0), %v890_v10  ;;  %v894_v20 = vpack.c.bf16 (!%p740_p0), %v331_v16, %v330_v15  ;;  %v315_v22 = vld [vmem:[#allocation6 + $0x28] sm:$0xff] (!%p740_p0)  ;;  %v922_v24 = vpack.c.bf16 (!%p740_p0), %v345_v23, %v344_v19  ;;  %v332_v25 = vld [vmem:[#allocation6 + $0xb0] sm:$0xff] (!%p740_p0)  ;;  %v333_v26 = vld [vmem:[#allocation6 + $0xb8] sm:$0xff] (!%p740_p0) }
  0x7e   : > { %920 = vmatpush3.bf16.msra.mxu1 (!%p740_p0), %v919_v18  ;;  %v346_v27 = vld [vmem:[#allocation6 + $0x120] sm:$0xff] (!%p740_p0)  ;;  %v347_v28 = vld [vmem:[#allocation6 + $0x128] sm:$0xff] (!%p740_p0)  ;;  %v896_v29 = vpack.c.bf16 (!%p740_p0), %v315_v22, %v314_v21  ;;  %v898_v30 = vpack.c.bf16 (!%p740_p0), %v333_v26, %v332_v25  ;;  %v316_v31 = vld [vmem:[#allocation6 + $0x30] sm:$0xff] (!%p740_p0) }
  0x7f   : > { %921 = vmatprep.subr.bf16.mxu1 %v1242_v7  ;;  %v317_v32 = vld [vmem:[#allocation6 + $0x38] sm:$0xff]  ;;  %v925_v33 = vpack.c.bf16 %v347_v28, %v346_v27  ;;  %v334_v34 = vld [vmem:[#allocation6 + $0xc0] sm:$0xff]  ;;  %v335_v35 = vld [vmem:[#allocation6 + $0xc8] sm:$0xff] }
  0x80   : > { %893 = vmatpush3.bf16.msra.mxu0 %v892_v17  ;;  %v348_v36 = vld [vmem:[#allocation6 + $0x130] sm:$0xff]  ;;  %v349_v37 = vld [vmem:[#allocation6 + $0x138] sm:$0xff]  ;;  %v900_v38 = vpack.c.bf16 %v317_v32, %v316_v31  ;;  %v902_v39 = vpack.c.bf16 %v335_v35, %v334_v34  ;;  %v318_v40 = vld [vmem:[#allocation6 + $0x40] sm:$0xff] }
  0x81   : > { %895 = vmatprep.subr.bf16.mxu0 %v894_v20  ;;  %v319_v41 = vld [vmem:[#allocation6 + $0x48] sm:$0xff]  ;;  %v928_v42 = vpack.c.bf16 %v349_v37, %v348_v36  ;;  %v336_v43 = vld [vmem:[#allocation6 + $0xd0] sm:$0xff]  ;;  %v337_v44 = vld [vmem:[#allocation6 + $0xd8] sm:$0xff] }
  0x82   : > { %923 = vmatpush3.bf16.msra.mxu1 %v922_v24  ;;  %v350_v45 = vld [vmem:[#allocation6 + $0x140] sm:$0xff]  ;;  %v351_v46 = vld [vmem:[#allocation6 + $0x148] sm:$0xff]  ;;  %v308_v47 = vld [vmem:[#allocation3 + $0x8] sm:$0xff]  ;;  %v904_v48 = vpack.c.bf16 %v319_v41, %v318_v40  ;;  %v906_v49 = vpack.c.bf16 %v337_v44, %v336_v43 }
  0x83   : > { %924 = vmatprep.subr.bf16.mxu1 %v1242_v7  ;;  %429 = vmatprep.mubr.f32.mxu0 %v308_v47  ;;  %v320_v50 = vld [vmem:[#allocation6 + $0x50] sm:$0xff]  ;;  %v321_v51 = vld [vmem:[#allocation6 + $0x58] sm:$0xff]  ;;  %v931_v52 = vpack.c.bf16 %v351_v46, %v350_v45  ;;  %v338_v53 = vld [vmem:[#allocation6 + $0xe0] sm:$0xff] }
  0x84   : > { %897 = vmatpush3.bf16.msra.mxu0 %v896_v29  ;;  %v339_v54 = vld [vmem:[#allocation6 + $0xe8] sm:$0xff]  ;;  %v352_v55 = vld [vmem:[#allocation6 + $0x150] sm:$0xff]  ;;  %v353_v56 = vld [vmem:[#allocation6 + $0x158] sm:$0xff]  ;;  %v908_v57 = vpack.c.bf16 %v321_v51, %v320_v50 }
  0x85   : > { %899 = vmatprep.subr.bf16.mxu0 %v898_v30  ;;  %v910_v58 = vpack.c.bf16 %v339_v54, %v338_v53  ;;  %v322_v59 = vld [vmem:[#allocation6 + $0x60] sm:$0xff]  ;;  %v323_v60 = vld [vmem:[#allocation6 + $0x68] sm:$0xff]  ;;  %v934_v61 = vpack.c.bf16 %v353_v56, %v352_v55  ;;  %v340_v62 = vld [vmem:[#allocation6 + $0xf0] sm:$0xff] }
  0x86   : > { %926 = vmatpush3.bf16.msra.mxu1 %v925_v33  ;;  %v341_v63 = vld [vmem:[#allocation6 + $0xf8] sm:$0xff]  ;;  %v354_v0 = vld [vmem:[#allocation6 + $0x160] sm:$0xff]  ;;  %v355_v1 = vld [vmem:[#allocation6 + $0x168] sm:$0xff]  ;;  %v912_v2 = vpack.c.bf16 %v323_v60, %v322_v59 }
  0x87   : > { %927 = vmatprep.subr.bf16.mxu1 %v1242_v7  ;;  %v914_v3 = vpack.c.bf16 %v341_v63, %v340_v62  ;;  %v324_v4 = vld [vmem:[#allocation6 + $0x70] sm:$0xff]  ;;  %v325_v5 = vld [vmem:[#allocation6 + $0x78] sm:$0xff]  ;;  %v937_v6 = vpack.c.bf16 %v355_v1, %v354_v0  ;;  %v307_v12 = vld [vmem:[#allocation3] sm:$0xff] }
  0x88   : > { %901 = vmatpush3.bf16.msra.mxu0 %v900_v38  ;;  %v356_v8 = vld [vmem:[#allocation6 + $0x170] sm:$0xff]  ;;  %v357_v9 = vld [vmem:[#allocation6 + $0x178] sm:$0xff]  ;;  %v916_v10 = vpack.c.bf16 %v325_v5, %v324_v4  ;;  %v741_v16 = vld [vmem:[%s1589_s2] ss:$0 sm:$0xff] }
  0x89   : > { %903 = vmatprep.subr.bf16.mxu0 %v902_v39  ;;  %v940_v11 = vpack.c.bf16 %v357_v9, %v356_v8  ;;  %v309_v13 = vld [vmem:[#allocation3 + $0x10] sm:$0xff] }
  0x8a   : > { %929 = vmatpush3.bf16.msra.mxu1 %v928_v42 }
  0x8b   : > { %930 = vmatprep.subr.bf16.mxu1 %v1242_v7 }
  0x8c   : > { %905 = vmatpush3.bf16.msra.mxu0 %v904_v48 }
  0x8d   : > { %907 = vmatprep.subr.bf16.mxu0 %v906_v49 }
  0x8e   : > { %932 = vmatpush3.bf16.msra.mxu1 %v931_v52 }
  0x8f   : > { %933 = vmatprep.subr.bf16.mxu1 %v1242_v7 }
  0x90   : > { %909 = vmatpush3.bf16.msra.mxu0 %v908_v57 }
  0x91   : > { %911 = vmatprep.subr.bf16.mxu0 %v910_v58 }
  0x92   : > { %935 = vmatpush3.bf16.msra.mxu1 %v934_v61 }
  0x93   : > { %936 = vmatprep.subr.bf16.mxu1 %v1242_v7 }
  0x94   : > { %913 = vmatpush3.bf16.msra.mxu0 %v912_v2 }
  0x95   : > { %915 = vmatprep.subr.bf16.mxu0 %v914_v3 }
  0x96   : > { %938 = vmatpush3.bf16.msra.mxu1 %v937_v6 }
  0x97   : > { %939 = vmatprep.subr.bf16.mxu1 %v1242_v7 }
  0x98   : > { %917 = vmatpush3.bf16.msra.mxu0 %v916_v10 }
  0x9a   : > { %941 = vmatpush3.bf16.msra.mxu1 %v940_v11 }
  0x9b   : > { %430 = vmatmul.mubr.f32.vlgmr.msra.gmra.mrb[0].mxu0 %v307_v12 }
  0x9d   : > { %849 = vmatmul.mubr.f32.vlgmr.msra.gmra.mrb[0].mxu1 %v309_v13 }
 0x16e   : > { %v779_v14 = vpop.f32.mrb[0].mxu0 }
 0x16f   : > { %v780_v15 = vpop.f32.mrb[1].mxu0 }
 0x170   : > { %v781_v17 = vadd.f32 %v780_v15, %v779_v14  ;;  %v501_v18 = vpop.f32.mrb[0].mxu1 }
 0x171   : > { %v850_v19 = vpop.f32.mrb[1].mxu1 }
 0x172   : > { %v432_v20 = vadd.f32 %v781_v17, %v741_v16 }
 0x174   : > { %v502_v21 = vadd.f32 %v501_v18, %v432_v20 }
 0x176   : > { %505 = vst [vmem:[#allocation2] sm:$0xff] %v502_v21 }
 0x177 PF: > { %v507_v7 = vld [vmem:[%s1483_s14] sm:$0xff]  ;;  %v508_v22 = vld [vmem:[%s1483_s14 + $0x8] sm:$0xff]  ;;  %v509_v23 = vld [vmem:[%s1483_s14 + $0x10] sm:$0xff]  ;;  %v1245_v24 = vmov 0.0|0.0   ;;  %vm1246_vm1 = vmmov 0   ;;  %v1247_v27 = vmov 0.0  }
 0x178   : > { %942 = vmatprep.subr.bf16.mxu0 %v1245_v24  ;;  %v943_v25 = vpack.c.bf16 %v508_v22, %v507_v7  ;;  %v510_v26 = vld [vmem:[%s1483_s14 + $0x18] sm:$0xff]  ;;  %883 = vmatprep.mubr.msk.f32.mxu0 %vm1246_vm1, %v1247_v27  ;;  %v511_v29 = vld [vmem:[%s1483_s14 + $0x20] sm:$0xff]  ;;  %v512_v30 = vld [vmem:[%s1483_s14 + $0x28] sm:$0xff]  ;;  %s744_s9 = sshll.u32 %s1226_s21, 7  ;;  %s617_s6 = sshll.u32 %s1498_s13, 4  ;;  %s1540_s6 = int_to_ptr.vmem [resolvable:$true] %s617_s6 }
 0x179   : > { %v946_v28 = vpack.c.bf16 %v510_v26, %v509_v23  ;;  %v949_v31 = vpack.c.bf16 %v512_v30, %v511_v29  ;;  %v513_v32 = vld [vmem:[%s1483_s14 + $0x30] sm:$0xff]  ;;  %v514_v33 = vld [vmem:[%s1483_s14 + $0x38] sm:$0xff]  ;;  %v515_v35 = vld [vmem:[%s1483_s14 + $0x40] sm:$0xff]  ;;  %s1538_s25 = scalar_lea.hbm %s1592_s5, %s744_s9  ;;  %s602_s24 = scalar_lea.sflag [#allocation5], %s1480_s10 }
 0x17a   : > { %944 = vmatpush3.bf16.msra.mxu0 %v943_v25  ;;  %v952_v34 = vpack.c.bf16 %v514_v33, %v513_v32  ;;  %v516_v36 = vld [vmem:[%s1483_s14 + $0x48] sm:$0xff]  ;;  %v517_v38 = vld [vmem:[%s1483_s14 + $0x50] sm:$0xff]  ;;  %v518_v39 = vld [vmem:[%s1483_s14 + $0x58] sm:$0xff]  ;;  %s1144_s26 = scalar_lea.vmem %s1540_s6, 128  ;;  %p1618_p3 = scmp.ne.s32.totalorder %s1602_s29, 0 }
 0x17b   : > { %945 = vmatprep.subr.bf16.mxu0 %v1245_v24  ;;  %v955_v37 = vpack.c.bf16 %v516_v36, %v515_v35  ;;  %v958_v40 = vpack.c.bf16 %v518_v39, %v517_v38  ;;  %v519_v41 = vld [vmem:[%s1483_s14 + $0x60] sm:$0xff]  ;;  %v520_v42 = vld [vmem:[%s1483_s14 + $0x68] sm:$0xff]  ;;  %v521_v44 = vld [vmem:[%s1483_s14 + $0x70] sm:$0xff]  ;;  %p1145_p5 = scmp.ne.s32.totalorder %s1540_s6, %s1144_s26  ;;  %s1248_s21 = smov [#allocation9]  }
 0x17c   : > { %v961_v43 = vpack.c.bf16 %v520_v42, %v519_v41  ;;  %v522_v45 = vld [vmem:[%s1483_s14 + $0x78] sm:$0xff]  ;;  %v742_v48 = vld [vmem:[%s302_s27] ss:$0 sm:$0xff]  ;;  %s1148_s16 = sshll.u32 %s1248_s21, 4  ;;  %s1149_s16 = int_to_ptr.vmem [resolvable:$false] %s1148_s16 }
 0x17d   : > { %v964_v46 = vpack.c.bf16 %v522_v45, %v521_v44  ;;  %v506_v47 = vld [vmem:[#allocation2] sm:$0xff]  ;;  %p1146_p9 = pnand %p1145_p5, %p1618_p3  ;;  %s1150_s27 = scalar_lea.vmem %s1149_s16, 256 }
 0x17e   : > { %947 = vmatpush3.bf16.msra.mxu0 %v946_v28  ;;  %p1151_p4 = scmp.lt.s32.totalorder %s1540_s6, %s1149_s16  ;;  %p1152_p6 = scmp.lt.s32.totalorder %s1150_s27, %s1144_s26 }
 0x17f   : > { %948 = vmatprep.subr.bf16.mxu0 %v1245_v24  ;;  %p1147_p1 = pneg %p1146_p9 }
 0x180   : > { %p1153_p8 = por %p1152_p6, %p1151_p4 }
 0x182   : > { %950 = vmatpush3.bf16.msra.mxu0 %v949_v31  ;;  %p1154_p12 = pnand %p1153_p8, %p1147_p1 }
 0x183   : > { %951 = vmatprep.subr.bf16.mxu0 %v1245_v24 }
 0x186   : > { %953 = vmatpush3.bf16.msra.mxu0 %v952_v34 }
 0x187   : > { %954 = vmatprep.subr.bf16.mxu0 %v1245_v24 }
 0x18a   : > { %956 = vmatpush3.bf16.msra.mxu0 %v955_v37 }
 0x18b   : > { %957 = vmatprep.subr.bf16.mxu0 %v1245_v24 }
 0x18e   : > { %959 = vmatpush3.bf16.msra.mxu0 %v958_v40 }
 0x18f   : > { %960 = vmatprep.subr.bf16.mxu0 %v1245_v24 }
 0x192   : > { %962 = vmatpush3.bf16.msra.mxu0 %v961_v43 }
 0x193   : > { %963 = vmatprep.subr.bf16.mxu0 %v1245_v24 }
 0x196   : > { %965 = vmatpush3.bf16.msra.mxu0 %v964_v46 }
 0x199   : > { %884 = vmatmul.mubr.f32.vlgmr.msra.gmra.mrb[0].mxu0 %v506_v47 }
 0x26c   : > { %v596_v49 = vpop.f32.mrb[0].mxu0 }
 0x26d   : > { %v597_v50 = vadd.f32 %v742_v48, %v596_v49  ;;  %v885_v51 = vpop.f32.mrb[1].mxu0 }
 0x26f   : > { %600 = vst [vmem:[%s1498_s13] sm:$0xff] %v597_v50 }
 0x270   : > { %1157 = shalt.err (!%p1154_p12)
}
 0x271   : > { %s1158_s10 = scalar_lea.hbm %s1538_s25, 128  ;;  %s1162_s7 = scalar_lea.hbm %s1592_s5, 384 }
 0x272   : > { %p1159_p10 = scmp.ne.s32.totalorder %s1538_s25, %s1158_s10  ;;  %p1163_p2 = scmp.lt.u32.totalorder %s1538_s25, %s1592_s5 }
 0x273   : > { %p1164_p7 = scmp.lt.u32.totalorder %s1162_s7, %s1158_s10  ;;  %p1166_p5 = scmp.lt.u32.totalorder %s1158_s10, %s1538_s25 }
 0x274   : > { %p1160_p11 = pnand %p1159_p10, %p1618_p3 }
 0x275   : > { %p1165_p0 = por %p1164_p7, %p1163_p2 }
 0x276   : > { %p1161_p13 = pneg %p1160_p11 }
 0x277   : > { %p1167_p9 = por %p1166_p5, %p1165_p0 }
 0x279   : > { %p1168_p1 = pnand %p1167_p9, %p1161_p13 }
 0x27b   : > { %1171 = shalt.err (!%p1168_p1)
}
 0x27c   : > { %976 = dma.vmem_to_hbm [thread:$0]  (%p1618_p3), %s1540_s6, 128, %s1538_s25, %s602_s24  }
 0x27d PF: > { %p998_p4 = scmp.ge.s32.totalorder %s1234_s23, 2  ;;  %s629_s9 = sand.u32 1, %s1214_s18  }
 0x27e   : > { %p1619_p6 = scmp.ne.s32.totalorder %s1603_s30, 0  ;;  %s630_s12 = scalar_lea.sflag [#allocation5], %s629_s9 }
 0x280   : > { %p990_p8 = pnand %p998_p4, %p1619_p6 }
 0x282   : > { %1209 = dma.done.wait (!%p990_p8), %s630_s12, 128  }
 0x283   : > { %1211 = vsyncadd (!%p990_p8), %s630_s12, 4294967168  ;;  %s20_s23 = sadd.s32 1, %s1234_s23   ;;  %s1620_s18 = smov %s1218_s19 }
 0x284   : > { %p17_p12 = scmp.ge.s32.totalorder %s20_s23, 5   ;;  %s1621_s19 = smov %s1222_s20 }
 0x285   : > { %s1622_s20 = smov %s1466_s15  ;;  %s1623_s21 = smov %s1230_s22 }
 0x286   : > { %s1624_s22 = smov %s1626_s17  ;;  %19 = sbr.rel (!%p17_p12) target bundleno = 6 (0x6), region = 100 }
 0x28d   :  { %635 = vsyncpa [#allocation4], 1 }
 0x28e   :  { %637 = vsyncpa [#allocation4 + $0x1], 1 }
 0x28f   :  { %638 = vsyncpa [#allocation7], 1 }
 0x290   :  { %639 = vsyncpa [#allocation5], 1 }
 0x291   :  { %641 = vsyncpa [#allocation5 + $0x1], 1 }

</bundles_post_ra>
